<compile_context>
chip_gen: v7x
topology: tpu7x:2x2x1
jax: 0.10.0
libtpu: 0.0.40
codegen_flags: <defaults>
</compile_context>

<pallas_src>
import jax
import jax.numpy as jnp
import numpy as np
from jax import lax
from jax.experimental import pallas as pl
from jax.experimental.pallas import tpu as pltpu

EPS = 1e-8  # torch.nn.CosineSimilarity default eps


def _cosine_link_kernel(idx_ref, gram_ref, out_ref):
    """One edge tile per grid step.

    idx_ref  : (2, TILE_E) int32   -- row 0 = head node ids, row 1 = tail node ids
    gram_ref : (m_aug, N)  float32 -- rows 0..N-1: gram = emb @ emb.T,
                                      row N: diag(gram) = per-node squared norms,
                                      rows N+1.. : zero padding (to multiple of 8)
    out_ref  : (1, TILE_E) float32 -- cosine-similarity scores (lane-dense)
    """
    A = gram_ref[...]                       # (m_aug, N)
    idx = idx_ref[...]                      # (2, TILE_E)
    n = A.shape[1]                          # number of nodes N
    te = idx.shape[1]

    heads = idx[0:1, :]                     # (1, TILE_E)
    tails = idx[1:2, :]                     # (1, TILE_E)

    # One-hot selectors (N on sublanes, edges on lanes).
    iota_n = lax.broadcasted_iota(jnp.int32, (n, te), 0)
    oh_h = (iota_n == heads).astype(A.dtype)                        # (N, TILE_E)
    oh_t = (iota_n == tails).astype(A.dtype)                        # (N, TILE_E)

    # MXU gather of gram columns (heads / tails). Row n of sel_* is the folded
    # squared-norm row, so norms come out of the same matmul for free.
    sel_h = jnp.dot(A, oh_h, preferred_element_type=jnp.float32)    # (m_aug, TILE_E)
    sel_t = jnp.dot(A, oh_t, preferred_element_type=jnp.float32)    # (m_aug, TILE_E)

    # dot[e] = gram[h[e], t[e]] : select tail row of the head-gathered columns
    # via one (N, TILE_E) multiply + sublane (XLU) reduce.
    dots = jnp.sum(sel_h[:n, :] * oh_t, axis=0, keepdims=True)      # (1, TILE_E)
    nn_h = sel_h[n:n + 1, :]                                        # (1, TILE_E) ||h||^2
    nn_t = sel_t[n:n + 1, :]                                        # (1, TILE_E) ||t||^2

    # torch aten: dot / sqrt(max(nn_h*nn_t, eps^2))  (rsqrt -> EUP slot)
    out_ref[...] = dots * lax.rsqrt(jnp.maximum(nn_h * nn_t, EPS * EPS))


def bert_link_predict(node_embs, heads, tails, labels, *, max_tile_e=512):
    """Equivalent of BERTLinkPredict.predict on expanded node embeddings.

    node_embs : (N, D)  float32
    heads     : (G, E)  int32   -- te[0] for each truncated graph
    tails     : (G, E)  int32   -- te[2]
    labels    : (G, E)  float32 -- te[3]
    Returns (y_pred, y), each of shape (G*E,).
    """
    N, D = node_embs.shape
    G, E = heads.shape
    total = G * E

    # --- Gram-matrix reformulation (contract over D once, full MXU depth) ---
    gram = jnp.dot(node_embs, node_embs.T,
                   precision=lax.Precision.HIGHEST,
                   preferred_element_type=jnp.float32)              # (N, N)
    nn = jnp.diagonal(gram)                                         # (N,) squared norms
    m_aug = ((N + 1 + 7) // 8) * 8                                  # pad rows to mult of 8
    gram_aug = jnp.zeros((m_aug, N), jnp.float32)
    gram_aug = gram_aug.at[:N, :].set(gram).at[N, :].set(nn)

    # --- Edge tiling: flatten, pad to lane-dense multiple of the tile ---
    ep_lane = max(128, ((total + 127) // 128) * 128)
    tile_e = min(max_tile_e, ep_lane)
    num_tiles = (ep_lane + tile_e - 1) // tile_e
    ep = num_tiles * tile_e
    pad = ep - total

    heads_p = jnp.pad(heads.reshape(total).astype(jnp.int32), (0, pad))
    tails_p = jnp.pad(tails.reshape(total).astype(jnp.int32), (0, pad))
    idx = jnp.stack([heads_p, tails_p], axis=0)                     # (2, ep)

    scores = pl.pallas_call(
        _cosine_link_kernel,
        out_shape=jax.ShapeDtypeStruct((1, ep), jnp.float32),
        grid=(num_tiles,),
        in_specs=[
            pl.BlockSpec((2, tile_e), lambda i: (0, i)),      # head/tail ids (pipelined)
            pl.BlockSpec((m_aug, N), lambda i: (0, 0)),       # gram_aug (resident)
        ],
        out_specs=pl.BlockSpec((1, tile_e), lambda i: (0, i)),
        compiler_params=pltpu.CompilerParams(
            dimension_semantics=("parallel",),                # shards edge tiles on v7x
            vmem_limit_bytes=32 * 1024 * 1024),
    )(idx, gram_aug)

    y_pred = scores[0, :total]
    y = labels.reshape(total).astype(jnp.float32)
    return y_pred, y


def _reference(node_embs, heads, tails):
    h = node_embs[heads]                                 # (G, E, D)
    t = node_embs[tails]                                 # (G, E, D)
    dot = jnp.sum(h * t, axis=-1)
    nh = jnp.sqrt(jnp.sum(h * h, axis=-1))
    nt = jnp.sqrt(jnp.sum(t * t, axis=-1))
    return (dot / jnp.maximum(nh * nt, EPS)).reshape(-1)


if __name__ == "__main__":
    key = jax.random.PRNGKey(0)
    k_emb, k_h, k_t, k_l = jax.random.split(key, 4)

    N, D = 16, 128      # nodes, hidden dim (BERT-style embedding width, lane-aligned)
    G, E = 3, 8         # truncated graphs, target edges per graph

    # Synthetic deterministic "node embeddings" standing in for the BERT encoder output.
    node_embs = jax.random.normal(k_emb, (N, D), dtype=jnp.float32)
    heads = jax.random.randint(k_h, (G, E), 0, N, dtype=jnp.int32)
    tails = jax.random.randint(k_t, (G, E), 0, N, dtype=jnp.int32)
    labels = jax.random.bernoulli(k_l, 0.5, (G, E)).astype(jnp.float32)

    y_pred, y = bert_link_predict(node_embs, heads, tails, labels)
    y_pred = jax.block_until_ready(y_pred)
    y = jax.block_until_ready(y)

    ref = _reference(node_embs, heads, tails)
    np.testing.assert_allclose(np.asarray(y_pred), np.asarray(ref), rtol=1e-5, atol=1e-5)
    assert y.shape == (G * E,)

    print("KERNEL_OK")
</pallas_src>

<mosaic_0001>
module attributes {stable_mosaic.version = 11 : i64} {
  func.func @_cosine_link_kernel(%arg0: i32, %arg1: memref<2x128xi32, #tpu.memory_space<vmem>>, %arg2: memref<24x16xf32, #tpu.memory_space<vmem>>, %arg3: memref<1x128xf32, #tpu.memory_space<vmem>>) attributes {dimension_semantics = [#tpu.dimension_semantics<parallel>], iteration_bounds = array<i64: 1>, scalar_prefetch = 0 : i64, scratch_operands = 0 : i64, tpu.core_type = #tpu.core_type<tc>, window_params = [{transform_indices = @transform_0, window_bounds = array<i64: 2, 128>}, {pipeline_mode = #tpu.pipeline_mode<synchronous>, transform_indices = @transform_1, window_bounds = array<i64: 24, 16>}, {transform_indices = @transform_2, window_bounds = array<i64: 1, 128>}]} {
    %c0 = arith.constant 0 : index
    %c0_0 = arith.constant 0 : index
    %0 = vector.load %arg2[%c0, %c0_0] : memref<24x16xf32, #tpu.memory_space<vmem>>, vector<24x16xf32>
    %c0_1 = arith.constant 0 : index
    %c0_2 = arith.constant 0 : index
    %1 = vector.load %arg1[%c0_1, %c0_2] : memref<2x128xi32, #tpu.memory_space<vmem>>, vector<2x128xi32>
    %2 = vector.extract_strided_slice %1 {offsets = [0, 0], sizes = [1, 128], strides = [1, 1]} : vector<2x128xi32> to vector<1x128xi32>
    %3 = vector.extract_strided_slice %1 {offsets = [1, 0], sizes = [1, 128], strides = [1, 1]} : vector<2x128xi32> to vector<1x128xi32>
    %4 = tpu.iota {dimensions = array<i32: 0>} : vector<16x128xi32>
    %5 = vector.broadcast %2 : vector<1x128xi32> to vector<16x128xi32>
    %6 = arith.cmpi eq, %4, %5 : vector<16x128xi32>
    %7 = arith.extui %6 : vector<16x128xi1> to vector<16x128xi32>
    %8 = arith.sitofp %7 : vector<16x128xi32> to vector<16x128xf32>
    %9 = vector.broadcast %3 : vector<1x128xi32> to vector<16x128xi32>
    %10 = arith.cmpi eq, %4, %9 : vector<16x128xi32>
    %11 = arith.extui %10 : vector<16x128xi1> to vector<16x128xi32>
    %12 = arith.sitofp %11 : vector<16x128xi32> to vector<16x128xf32>
    %cst = arith.constant dense<0.000000e+00> : vector<24x128xf32>
    %13 = tpu.matmul %0, %8, %cst {dimension_numbers = #tpu.dot_dimension_numbers<[1], [0], [0], [1], [0, 0, 1, 1], [], []>} : vector<24x16xf32>, vector<16x128xf32>, vector<24x128xf32> -> vector<24x128xf32>
    %cst_3 = arith.constant dense<0.000000e+00> : vector<24x128xf32>
    %14 = tpu.matmul %0, %12, %cst_3 {dimension_numbers = #tpu.dot_dimension_numbers<[1], [0], [0], [1], [0, 0, 1, 1], [], []>} : vector<24x16xf32>, vector<16x128xf32>, vector<24x128xf32> -> vector<24x128xf32>
    %15 = vector.extract_strided_slice %13 {offsets = [0, 0], sizes = [16, 128], strides = [1, 1]} : vector<24x128xf32> to vector<16x128xf32>
    %16 = arith.mulf %15, %12 : vector<16x128xf32>
    %cst_4 = arith.constant dense<0.000000e+00> : vector<128xf32>
    %17 = vector.multi_reduction <add>, %16, %cst_4 [0] : vector<16x128xf32> to vector<128xf32>
    %18 = vector.shape_cast %17 : vector<128xf32> to vector<1x128xf32>
    %19 = vector.extract_strided_slice %13 {offsets = [16, 0], sizes = [1, 128], strides = [1, 1]} : vector<24x128xf32> to vector<1x128xf32>
    %20 = vector.extract_strided_slice %14 {offsets = [16, 0], sizes = [1, 128], strides = [1, 1]} : vector<24x128xf32> to vector<1x128xf32>
    %21 = arith.mulf %19, %20 : vector<1x128xf32>
    %cst_5 = arith.constant 1.000000e-16 : f32
    %22 = vector.broadcast %cst_5 : f32 to vector<1x128xf32>
    %23 = arith.maximumf %21, %22 : vector<1x128xf32>
    %24 = math.rsqrt %23 : vector<1x128xf32>
    %25 = arith.mulf %18, %24 : vector<1x128xf32>
    %c0_6 = arith.constant 0 : index
    %c0_7 = arith.constant 0 : index
    %26 = vector.load %arg3[%c0_6, %c0_7] : memref<1x128xf32, #tpu.memory_space<vmem>>, vector<1x128xf32>
    tpu.vector_store %arg3[%c0_6, %c0_7], %25 {strides = array<i32>} : memref<1x128xf32, #tpu.memory_space<vmem>>, vector<1x128xf32>,
    return
  }
  func.func @transform_0(%arg0: i32) -> (i32, i32) {
    %c0_i32 = arith.constant 0 : i32
    %c0_i32_0 = arith.constant 0 : i32
    return %c0_i32, %arg0 : i32, i32
  }
  func.func @transform_1(%arg0: i32) -> (i32, i32) {
    %c0_i32 = arith.constant 0 : i32
    %c0_i32_0 = arith.constant 0 : i32
    %c0_i32_1 = arith.constant 0 : i32
    return %c0_i32, %c0_i32_0 : i32, i32
  }
  func.func @transform_2(%arg0: i32) -> (i32, i32) {
    %c0_i32 = arith.constant 0 : i32
    %c0_i32_0 = arith.constant 0 : i32
    return %c0_i32, %arg0 : i32, i32
  }
}

</mosaic_0001>

<bundles_post_ra>
// kernel: tpu_custom_call.1
= control target key start
LH: loop header
LB: loop body
LE: loop exit
PB: predicated region body
PF: predicated region fallthrough
CT: control target
= control target key end

     0   :  { %v16_v0 = vlaneseq  ;;  %v322_v1 = vmov 0.0|0.0   ;;  %vm323_vm0 = vmmov 0   ;;  %v324_v3 = vmov 0.0   ;;  %s376_s0 = inlined_call_operand.vmem [shape: s32[2,128], index: 0, kind: input, shape index: {}]   ;;  %s377_s1 = inlined_call_operand.vmem [shape: f32[24,16], index: 1, kind: input, shape index: {}]   ;;  %s378_s2 = inlined_call_operand.hbm [shape: f32[1,128], index: 2, kind: output, shape index: {}]  }
   0x1   :  { %285 = vmatprep.subr.bf16.mxu0 %v322_v1  ;;  %288 = vmatprep.subr.bf16.mxu1 %v322_v1 }
   0x2   :  { %v17_v2 = vshrl.u32 %v16_v0, 7  ;;  %263 = vmatprep.mubr.msk.f32.mxu0 %vm323_vm0, %v324_v3  ;;  %276 = vmatprep.mubr.msk.f32.mxu1 %vm323_vm0, %v324_v3 }
   0x3   :  { %7 = vsyncpa [#allocation3], 0  ;;  %v15_v4 = vld [vmem:[%s376_s0] sm:$0x3]  ;;  %v325_v10 = vmov 1.0|1.0  }
   0x4   :  { %v18_v5 = vadd.s32 8, %v17_v2  ;;  %v21_v6 = vsub.s32 0, %v17_v2  ;;  %v31_v7 = vsub.s32 1, %v17_v2  ;;  %v12_v11 = vld [vmem:[%s377_s1] sm:$0xff]  ;;  %vm39_vm7 = vcmask 130048   ;;  %v13_v12 = vld [vmem:[%s377_s1 + $0x8] sm:$0xff] }
   0x5   :  { %v14_v13 = vld [vmem:[%s377_s1 + $0x10] sm:$0xff]  ;;  %s326_s1 = smov [#allocation2]  }
   0x6   :  { %v22_v8 = vrot.slane %v15_v4, %v21_v6  ;;  %v32_v9 = vrot.slane %v15_v4, %v31_v7  ;;  %s227_s16 = sshll.u32 %s326_s1, 4  ;;  %s228_s16 = int_to_ptr.vmem [resolvable:$true] %s227_s16 }
   0x7   :  { %s298_s17 = scalar_lea.vmem %s228_s16, 16  ;;  %s302_s18 = scalar_lea.vmem %s228_s16, 32 }
   0x8   :  { %vm23_vm1 = vcmp.eq.s32.totalorder %v17_v2, %v22_v8  ;;  %vm24_vm2 = vcmp.eq.s32.totalorder %v18_v5, %v22_v8  ;;  %vm33_vm3 = vcmp.eq.s32.totalorder %v17_v2, %v32_v9  ;;  %vm34_vm4 = vcmp.eq.s32.totalorder %v18_v5, %v32_v9  ;;  %p299_p0 = scmp.ne.s32.totalorder %s228_s16, %s298_s17  ;;  %p303_p1 = scmp.lt.s32.totalorder %s228_s16, %s228_s16 }
   0x9   :  { %vm286_vm5 = vmpackc.low %vm24_vm2, %vm23_vm1  ;;  %v237_v14 = vsel %vm33_vm3, 1.0, %v324_v3  ;;  %v238_v20 = vsel %vm34_vm4, 1.0, %v324_v3  ;;  %p304_p2 = scmp.lt.s32.totalorder %s302_s18, %s298_s17 }
   0xa   :  { %287 = vmatpush3.bf16.msk.msra.mxu0 %vm286_vm5, %v325_v10  ;;  %vm289_vm6 = vmpackc.low %vm34_vm4, %vm33_vm3 }
   0xb   :  { %290 = vmatpush3.bf16.msk.msra.mxu1 %vm289_vm6, %v325_v10  ;;  %p305_p3 = por %p304_p2, %p303_p1 }
   0xd   :  { %264 = vmatmul.mubr.msk.f32.vlgmr.msra.gmra.mrb[0].mxu0 %vm39_vm7, %v12_v11  ;;  %p306_p4 = pnand %p305_p3, %p299_p0 }
   0xe   :  { %277 = vmatmul.mubr.msk.f32.vlgmr.msra.gmra.mrb[0].mxu1 %vm39_vm7, %v12_v11  ;;  %266 = vmatprep.mubr.msk.f32.mxu0 %vm323_vm0, %v324_v3 }
   0xf   :  { %279 = vmatprep.mubr.msk.f32.mxu1 %vm323_vm0, %v324_v3 }
  0x11   :  { %267 = vmatmul.mubr.msk.f32.gmra.mrb[2].mxu0 %vm39_vm7, %v13_v12 }
  0x12   :  { %280 = vmatmul.mubr.msk.f32.gmra.mrb[2].mxu1 %vm39_vm7, %v13_v12  ;;  %269 = vmatprep.mubr.msk.f32.mxu0 %vm323_vm0, %v324_v3 }
  0x13   :  { %282 = vmatprep.mubr.msk.f32.mxu1 %vm323_vm0, %v324_v3 }
  0x15   :  { %270 = vmatmul.mubr.msk.f32.gmra.mrb[4].mxu0 %vm39_vm7, %v14_v13 }
  0x16   :  { %283 = vmatmul.mubr.msk.f32.gmra.mrb[4].mxu1 %vm39_vm7, %v14_v13 }
  0xe0   :  { %v115_v15 = vpop.f32.mrb[0].mxu0 }
  0xe1   :  { %v207_v16 = vmul.f32 %v237_v14, %v115_v15  ;;  %v195_v17 = vpop.f32.mrb[0].mxu1  ;;  %v265_v18 = vpop.f32.mrb[1].mxu0 }
  0xe2   :  { %v278_v19 = vpop.f32.mrb[1].mxu1 }
  0xe4   :  { %v120_v21 = vpop.f32.mrb[2].mxu0 }
  0xe5   :  { %v208_v22 = vmul.f32 %v238_v20, %v120_v21  ;;  %v199_v23 = vpop.f32.mrb[2].mxu1  ;;  %v268_v24 = vpop.f32.mrb[3].mxu0 }
  0xe6   :  { %v281_v25 = vpop.f32.mrb[3].mxu1 }
  0xe7   :  { %v209_v26 = vadd.f32 %v208_v22, %v207_v16 }
  0xe8   :  { %v125_v27 = vpop.f32.mrb[4].mxu0 }
  0xe9   :  { %v210_v28 = vrot.slane %v209_v26, 4  ;;  %v203_v29 = vpop.f32.mrb[4].mxu1  ;;  %v271_v30 = vpop.f32.mrb[5].mxu0 }
  0xea   :  { %v216_v31 = vmul.f32 %v203_v29, %v125_v27  ;;  %v284_v32 = vpop.f32.mrb[5].mxu1 }
  0xeb   :  { %v211_v33 = vadd.f32 %v210_v28, %v209_v26 }
  0xec   :  { %v217_v34 = vmax.f32 %v216_v31, 1e-16 }
  0xed   :  { %v212_v35 = vrot.slane %v211_v33, 2 }
  0xee   :  { %296 = vrsqrt.f32 %v217_v34 }
  0xef   :  { %v213_v36 = vadd.f32 %v212_v35, %v211_v33 }
  0xf1   :  { %v214_v37 = vrot.slane %v213_v36, 1 }
  0xf3   :  { %v215_v38 = vadd.f32 %v214_v37, %v213_v36 }
  0xf8   :  { %v297_v39 = vpop.eup %296 }
  0xf9   :  { %v219_v40 = vmul.f32 %v297_v39, %v215_v38 }
  0xfb   :  { %220 = vst [vmem:[#allocation2] sm:$0x1] %v219_v40 }
  0xfc   :  { %309 = shalt.err (!%p306_p4)
}
  0xfd   :  { %s310_s21 = scalar_lea.hbm %s378_s2, 16 }
  0xfe   :  { %p311_p5 = scmp.ne.s32.totalorder %s378_s2, %s310_s21  ;;  %p314_p6 = scmp.lt.u32.totalorder %s310_s21, %s378_s2 }
 0x100   :  { %p316_p7 = pnand %p314_p6, %p311_p5 }
 0x102   :  { %319 = shalt.err (!%p316_p7)
}
 0x103   :  { %230 = dma.vmem_to_hbm [thread:$0]  %s228_s16, 16, %s378_s2, [#allocation3]  }
 0x104   :  { %320 = dma.done.wait [#allocation3], 16  }
 0x105   :  { %321 = vsyncadd [#allocation3], 4294967280 }
 0x106   :  { %234 = vsyncpa [#allocation3], 1 }

</bundles_post_ra>
